<compile_context>
chip_gen: v7x
topology: tpu7x:2x2x1
jax: 0.10.0
libtpu: 0.0.40
codegen_flags: <defaults>
</compile_context>

<pallas_src>
import functools

import numpy as np
import jax
import jax.numpy as jnp
from jax import lax
from jax.experimental import pallas as pl
from jax.experimental.pallas import tpu as pltpu


# Parameters consumed by the fused encoder-layer kernel (value_proj handled separately).
LAYER_PARAM_NAMES = (
    "Woff", "boff",    # sampling_offsets
    "Wattn", "battn",  # attention_weights
    "Wout", "bout",    # output_proj
    "g1", "be1",       # norm1
    "W1", "b1",        # linear1
    "W2", "b2",        # linear2
    "g2", "be2",       # norm2
)


def _round_up(x, m):
    return ((x + m - 1) // m) * m


def _device_kind():
    try:
        return jax.devices()[0].device_kind.lower()
    except Exception:
        return ""


def _is_pre_v6():
    # v5e and older: no bf16 VPU -> keep triangle-weight math in f32 there.
    kind = _device_kind()
    return any(t in kind for t in ("v2", "v3", "v4", "v5"))


@functools.lru_cache(maxsize=1)
def _derive_vmem_limit_bytes():
    """Per-generation scoped-VMEM budget (~85% of capacity, headroom for compiler scratch)."""
    cap = None
    try:
        info = pltpu.get_tpu_info()
        for attr in ("vmem_capacity_bytes", "vmem_size_bytes", "vmem_bytes"):
            v = getattr(info, attr, None)
            if v:
                cap = int(v)
                break
    except Exception:
        cap = None
    if cap is None:
        cap = (64 if "v7" in _device_kind() else 128) * 1024 * 1024
    return max(32 * 1024 * 1024, int(cap * 0.85))


@functools.lru_cache(maxsize=1)
def _single_buffer_supported():
    """Feature/correctness check for pipeline_mode=pl.Buffered(1) (single-buffered blocks)."""
    try:
        x = (jnp.arange(2 * 32 * 128, dtype=jnp.float32).reshape(2, 32, 128)) * 1e-3
        w = (jnp.arange(128 * 128, dtype=jnp.float32).reshape(128, 128)) * 1e-4
        v = (jnp.arange(2 * 8 * 128, dtype=jnp.float32).reshape(2, 8, 128)) * 1e-3

        def k(x_ref, w_ref, v_ref, o_ref):
            o_ref[...] = (jnp.dot(x_ref[0], w_ref[...],
                                  preferred_element_type=jnp.float32)
                          + jnp.sum(v_ref[0]))[None]

        out = pl.pallas_call(
            k,
            out_shape=jax.ShapeDtypeStruct((2, 32, 128), jnp.float32),
            grid=(2, 2),
            in_specs=[
                pl.BlockSpec((1, 16, 128), lambda b, q: (b, q, 0)),
                pl.BlockSpec((128, 128), lambda b, q: (0, 0),
                             pipeline_mode=pl.Buffered(1)),
                pl.BlockSpec((1, 8, 128), lambda b, q: (b, 0, 0),
                             pipeline_mode=pl.Buffered(1)),
            ],
            out_specs=pl.BlockSpec((1, 16, 128), lambda b, q: (b, q, 0)),
        )(x, w, v)
        expect = (jnp.einsum("bqd,dk->bqk", x, w)
                  + jnp.sum(v, axis=(1, 2))[:, None, None])
        return bool(np.allclose(np.asarray(out), np.asarray(expect),
                                rtol=1e-4, atol=1e-4))
    except Exception:
        return False


def _const_spec(x, single_buffer):
    """BlockSpec for a grid-invariant (constant index_map) operand."""
    nd = x.ndim
    idx = lambda b, q, nd=nd: (0,) * nd
    if single_buffer:
        return pl.BlockSpec(x.shape, idx, pipeline_mode=pl.Buffered(1))
    return pl.BlockSpec(x.shape, idx)


def _layer_norm(x, gamma, beta, eps=1e-5):
    mu = jnp.mean(x, axis=-1, keepdims=True)
    xc = x - mu
    var = jnp.mean(xc * xc, axis=-1, keepdims=True)
    return xc * lax.rsqrt(var + eps) * gamma + beta


# ----------------------------------------------------------------------------------
# Kernel 1: value projection (src @ Wv + bv) -> bf16
# ----------------------------------------------------------------------------------
def _value_proj_kernel(src_ref, wv_ref, bv_ref, out_ref):
    v = jnp.dot(src_ref[0].astype(wv_ref.dtype), wv_ref[...],
                preferred_element_type=jnp.float32) + bv_ref[...]
    out_ref[0] = v.astype(out_ref.dtype)


def run_value_proj(src, Wv_bf16, bv, q_tile, vmem_limit, single_buffer):
    N, Len, D = src.shape
    assert Len % q_tile == 0 and q_tile % 8 == 0
    nq = Len // q_tile
    return pl.pallas_call(
        _value_proj_kernel,
        out_shape=jax.ShapeDtypeStruct((N, Len, D), jnp.bfloat16),
        grid=(N, nq),
        in_specs=[pl.BlockSpec((1, q_tile, D), lambda b, q: (b, q, 0)),
                  _const_spec(Wv_bf16, single_buffer),
                  _const_spec(bv, single_buffer)],
        out_specs=pl.BlockSpec((1, q_tile, D), lambda b, q: (b, q, 0)),
        compiler_params=pltpu.CompilerParams(
            dimension_semantics=("parallel", "parallel"),
            vmem_limit_bytes=vmem_limit),
    )(src, Wv_bf16, bv)


# ----------------------------------------------------------------------------------
# Kernel 2: fused MSDeformAttn + LayerNorm + FFN + LayerNorm for one query tile
# ----------------------------------------------------------------------------------
def _encoder_layer_math(src, pos, basexy, value_ref, p, spatial_shapes, level_start,
                        n_heads, n_points, wdtype, hw_chunk):
    """One DeformableTransformerEncoderLayer on one (query-tile, batch-element).

    src, pos  : (Lq, D)        basexy : (Lq, 2L) pixel-space base coords (ref*W-0.5, ref*H-0.5)
    value_ref : Ref (1, Len, D) bf16 (projected value, full sequence, resident in VMEM)
    """
    Lq, D = src.shape
    L = len(spatial_shapes)
    M = n_heads
    P = n_points
    Dh = D // M
    LP = L * P
    f32 = jnp.float32
    cdt = value_ref.dtype        # bf16 MXU operand dtype

    # ---- MSDeformAttn ----
    q = src + pos                                                      # with_pos_embed

    # Offset projection stays f32 (coordinate precision); attention logits use bf16 operands.
    off = jnp.dot(q, p["Woff"], preferred_element_type=f32) + p["boff"]          # (Lq, M*LP*2)
    attn_logits = jnp.dot(q.astype(p["Wattn"].dtype), p["Wattn"],
                          preferred_element_type=f32) + p["battn"]               # (Lq, M*LP)

    # Per-head softmax (per-head max -> no flush-to-zero failure mode), normalization deferred:
    # unnormalized exps are folded into the sampling weights; the per-head reciprocal of the
    # denominator (EUP approx) is applied to the per-head accumulators after the matmuls.
    e_h, inv_den = [], []
    for m in range(M):
        lm = attn_logits[:, m * LP:(m + 1) * LP]                       # (Lq, LP)
        em = jnp.exp(lm - jnp.max(lm, axis=-1, keepdims=True))
        inv_den.append(pl.reciprocal(jnp.sum(em, axis=-1, keepdims=True), approx=True))
        e_h.append(em)

    # ---- sampling: dense bilinear (grid_sample, zeros padding, align_corners=False),
    #      HW axis chunked; attention weights folded into the triangle weights so each
    #      (head, level-chunk) is ONE (Lq, chunk) x (chunk, Dh) matmul. ----
    head_acc = [jnp.zeros((Lq, Dh), f32) for _ in range(M)]
    for l, (H, W) in enumerate(spatial_shapes):
        HW = H * W
        start = level_start[l]
        base_x = basexy[:, l:l + 1]                                    # (Lq, 1) = ref_x*W - 0.5
        base_y = basexy[:, L + l:L + l + 1]                            # (Lq, 1) = ref_y*H - 0.5

        # Per-head point-major sampling coords / unnormalized attention for this level,
        # hoisted out of the chunk loop. Shapes (P, Lq, 1): leading point axis keeps the
        # (Lq, chunk) minor dims vreg-dense (no sublane padding).
        sx_l, sy_l, a_l = [], [], []
        for m in range(M):
            cb = (m * L + l) * P * 2
            sx_l.append(jnp.stack([base_x + off[:, cb + 2 * pt:cb + 2 * pt + 1]
                                   for pt in range(P)], axis=0))
            sy_l.append(jnp.stack([base_y + off[:, cb + 2 * pt + 1:cb + 2 * pt + 2]
                                   for pt in range(P)], axis=0))
            a_l.append(jnp.stack([e_h[m][:, l * P + pt:l * P + pt + 1]
                                  for pt in range(P)], axis=0).astype(wdtype))

        for c0 in range(0, HW, hw_chunk):
            csz = min(hw_chunk, HW - c0)
            s_idx = c0 + lax.broadcasted_iota(jnp.int32, (1, 1, csz), 2)
            wpos = (s_idx % W).astype(f32)                             # (1,1,csz)
            hpos = (s_idx // W).astype(f32)
            v_chunk = value_ref[0, start + c0:start + c0 + csz, :]     # (csz, D) bf16
            for m in range(M):
                # coordinate subtraction in f32 (large coords), triangles/wsum in wdtype
                dx = (sx_l[m] - wpos).astype(wdtype)                   # (P, Lq, csz)
                dy = (sy_l[m] - hpos).astype(wdtype)
                tri = (jnp.maximum(1.0 - jnp.abs(dx), 0.0) *
                       jnp.maximum(1.0 - jnp.abs(dy), 0.0))
                wsum = jnp.sum(tri * a_l[m], axis=0)                   # (Lq, csz)
                head_acc[m] = head_acc[m] + jnp.dot(
                    wsum.astype(cdt), v_chunk[:, m * Dh:(m + 1) * Dh],
                    preferred_element_type=f32)                        # (Lq, Dh)

    # per-head softmax normalization, concat heads, ONE output_proj matmul
    heads = jnp.concatenate(
        [head_acc[m] * inv_den[m] for m in range(M)], axis=-1)         # (Lq, D)
    src2 = jnp.dot(heads.astype(p["Wout"].dtype), p["Wout"],
                   preferred_element_type=f32) + p["bout"]

    # ---- residual + norm1 (dropout1 = identity in eval mode) ----
    x = _layer_norm(src + src2, p["g1"], p["be1"])

    # ---- FFN (dropout2/3 = identity in eval mode), bf16 MXU operands ----
    h = jnp.maximum(jnp.dot(x.astype(p["W1"].dtype), p["W1"],
                            preferred_element_type=f32) + p["b1"], 0.0)
    x2 = jnp.dot(h.astype(p["W2"].dtype), p["W2"],
                 preferred_element_type=f32) + p["b2"]
    return _layer_norm(x + x2, p["g2"], p["be2"])


def _encoder_layer_kernel(spatial_shapes, level_start, n_heads, n_points, wdtype, hw_chunk,
                          src_ref, pos_ref, basexy_ref, value_ref, *refs):
    out_ref = refs[-1]
    param_refs = refs[:-1]
    p = {name: r[...] for name, r in zip(LAYER_PARAM_NAMES, param_refs)}
    y = _encoder_layer_math(src_ref[0], pos_ref[0], basexy_ref[0], value_ref, p,
                            spatial_shapes, level_start, n_heads, n_points,
                            wdtype, hw_chunk)
    out_ref[0] = y.astype(out_ref.dtype)


def run_encoder_layer(src, pos, basexy, value, params, spatial_shapes, level_start,
                      n_heads, n_points, q_tile, hw_chunk, wdtype, vmem_limit,
                      single_buffer):
    N, Len, D = src.shape
    assert Len % q_tile == 0 and q_tile % 8 == 0
    nq = Len // q_tile
    param_list = [params[name] for name in LAYER_PARAM_NAMES]
    kernel = functools.partial(_encoder_layer_kernel, spatial_shapes, level_start,
                               n_heads, n_points, wdtype, hw_chunk)

    def tile_spec(last):
        return pl.BlockSpec((1, q_tile, last), lambda b, q: (b, q, 0))

    # Full-sequence projected value, resident per batch element (index changes only with b).
    if single_buffer:
        value_spec = pl.BlockSpec((1, Len, D), lambda b, q: (b, 0, 0),
                                  pipeline_mode=pl.Buffered(1))
    else:
        value_spec = pl.BlockSpec((1, Len, D), lambda b, q: (b, 0, 0))

    in_specs = ([tile_spec(D), tile_spec(D), tile_spec(basexy.shape[-1]), value_spec]
                + [_const_spec(w, single_buffer) for w in param_list])

    # Batch stays the leading grid axis (megacore sharding splits (N, nq) evenly; on v7x
    # each core holds its own resident value slab -> reflected in the per-core VMEM budget).
    return pl.pallas_call(
        kernel,
        out_shape=jax.ShapeDtypeStruct((N, Len, D), src.dtype),
        grid=(N, nq),
        in_specs=in_specs,
        out_specs=pl.BlockSpec((1, q_tile, D), lambda b, q: (b, q, 0)),
        compiler_params=pltpu.CompilerParams(
            dimension_semantics=("parallel", "parallel"),
            vmem_limit_bytes=vmem_limit),
    )(src, pos, basexy, value, *param_list)


# ----------------------------------------------------------------------------------
# Host glue
# ----------------------------------------------------------------------------------
def get_reference_points(spatial_shapes, valid_ratios):
    """Exact JAX port of DeformableTransformerEncoder.get_reference_points."""
    ref_list = []
    for lvl, (H, W) in enumerate(spatial_shapes):
        ref_y, ref_x = jnp.meshgrid(
            jnp.linspace(0.5, H - 0.5, H, dtype=jnp.float32),
            jnp.linspace(0.5, W - 0.5, W, dtype=jnp.float32),
            indexing="ij")
        ref_y = ref_y.reshape(-1)[None] / (valid_ratios[:, None, lvl, 1] * H)
        ref_x = ref_x.reshape(-1)[None] / (valid_ratios[:, None, lvl, 0] * W)
        ref_list.append(jnp.stack((ref_x, ref_y), -1))
    reference_points = jnp.concatenate(ref_list, 1)                          # (N, Len, 2)
    reference_points = reference_points[:, :, None] * valid_ratios[:, None]  # (N, Len, L, 2)
    return reference_points


def deformable_transformer_encoder(src, spatial_shapes, level_start_index,
                                   valid_ratios, layer_params, pos=None,
                                   n_heads=8, n_points=4, q_tile=None, hw_chunk=512):
    N, Len, D = src.shape
    L = len(spatial_shapes)
    if pos is None:
        pos = jnp.zeros_like(src)

    pre_v6 = _is_pre_v6()
    wdtype = jnp.float32 if pre_v6 else jnp.bfloat16     # v5e/older: no bf16 VPU
    if q_tile is None:
        q_tile = 128 if pre_v6 else 256
    q_tile = _round_up(max(8, int(q_tile)), 8)
    hw_chunk = max(128, int(hw_chunk))
    vmem_limit = _derive_vmem_limit_bytes()
    single_buffer = _single_buffer_supported()

    # Precompute pixel-space base coordinates per level and pack into one lane-dense tensor:
    #   basexy[..., l] = ref_x*W_l - 0.5 , basexy[..., L+l] = ref_y*H_l - 0.5
    reference_points = get_reference_points(spatial_shapes, valid_ratios)    # (N, Len, L, 2)
    wh = jnp.asarray([[w, h] for (h, w) in spatial_shapes], jnp.float32)     # (L, 2) -> [W, H]
    base = reference_points * wh[None, None, :, :] - 0.5
    basexy = jnp.concatenate([base[..., 0], base[..., 1]], axis=-1)          # (N, Len, 2L)

    # Pad Len to a multiple of q_tile. Padded query rows are computed-and-discarded; padded
    # value rows are never addressed because each level region ends before the true Len.
    Len_pad = _round_up(Len, q_tile)
    if Len_pad != Len:
        padq = Len_pad - Len
        src = jnp.pad(src, ((0, 0), (0, padq), (0, 0)))
        pos = jnp.pad(pos, ((0, 0), (0, padq), (0, 0)))
        basexy = jnp.pad(basexy, ((0, 0), (0, padq), (0, 0)))

    mxu = jnp.bfloat16
    out = src
    for params in layer_params:
        value = run_value_proj(out, params["Wv"].astype(mxu), params["bv"],
                               q_tile, vmem_limit, single_buffer)
        p = dict(params)                       # host-side bf16 cast of large matmul weights
        p["Wattn"] = params["Wattn"].astype(mxu)
        p["Wout"] = params["Wout"].astype(mxu)
        p["W1"] = params["W1"].astype(mxu)
        p["W2"] = params["W2"].astype(mxu)
        out = run_encoder_layer(out, pos, basexy, value, p, spatial_shapes,
                                level_start_index, n_heads, n_points, q_tile,
                                hw_chunk, wdtype, vmem_limit, single_buffer)
    return out[:, :Len, :]


# ----------------------------------------------------------------------------------
# Independent float32 NumPy reference (gather-style grid_sample), literal port of the
# PyTorch MSDeformAttn / encoder-layer math -- NOT shared with the kernel code path.
# ----------------------------------------------------------------------------------
def _np_softmax(x, axis):
    x = x - x.max(axis=axis, keepdims=True)
    e = np.exp(x)
    return e / e.sum(axis=axis, keepdims=True)


def _np_layer_norm(x, g, b, eps=1e-5):
    mu = x.mean(-1, keepdims=True)
    var = ((x - mu) ** 2).mean(-1, keepdims=True)
    return (x - mu) / np.sqrt(var + eps) * g + b


def encoder_forward_numpy_ref(src, spatial_shapes, level_start, reference_points,
                              layer_params, pos, n_heads, n_points):
    src = np.asarray(src, np.float32)
    pos = np.asarray(pos, np.float32)
    ref = np.asarray(reference_points, np.float32)          # (N, Len, L, 2)
    N, Len, D = src.shape
    L = len(spatial_shapes)
    M, P = n_heads, n_points
    Dh = D // M
    out = src
    for params in layer_params:
        p = {k: np.asarray(v, np.float32) for k, v in params.items()}
        q = out + pos
        value = out @ p["Wv"] + p["bv"]                                       # (N, Len, D)
        off = (q @ p["Woff"] + p["boff"]).reshape(N, Len, M, L, P, 2)
        attn = (q @ p["Wattn"] + p["battn"]).reshape(N, Len, M, L * P)
        attn = _np_softmax(attn, -1).reshape(N, Len, M, L, P)
        heads = np.zeros((N, Len, M, Dh), np.float32)
        for n in range(N):
            for m in range(M):
                for l, (H, W) in enumerate(spatial_shapes):
                    start = level_start[l]
                    v = value[n, start:start + H * W,
                              m * Dh:(m + 1) * Dh].reshape(H, W, Dh)
                    for pt in range(P):
                        loc_x = ref[n, :, l, 0] + off[n, :, m, l, pt, 0] / W
                        loc_y = ref[n, :, l, 1] + off[n, :, m, l, pt, 1] / H
                        sx = loc_x * W - 0.5                  # align_corners=False pixel coords
                        sy = loc_y * H - 0.5
                        x0 = np.floor(sx).astype(np.int64)
                        y0 = np.floor(sy).astype(np.int64)
                        wx1 = sx - x0
                        wx0 = 1.0 - wx1
                        wy1 = sy - y0
                        wy0 = 1.0 - wy1

                        def tap(yi, xi):
                            valid = ((xi >= 0) & (xi < W) &
                                     (yi >= 0) & (yi < H)).astype(np.float32)
                            vi = v[np.clip(yi, 0, H - 1), np.clip(xi, 0, W - 1)]
                            return vi * valid[:, None]

                        samp = (tap(y0, x0) * (wy0 * wx0)[:, None] +
                                tap(y0, x0 + 1) * (wy0 * wx1)[:, None] +
                                tap(y0 + 1, x0) * (wy1 * wx0)[:, None] +
                                tap(y0 + 1, x0 + 1) * (wy1 * wx1)[:, None])
                        heads[n, :, m] += attn[n, :, m, l, pt][:, None] * samp
        src2 = heads.reshape(N, Len, D) @ p["Wout"] + p["bout"]
        x = out + src2
        x = _np_layer_norm(x, p["g1"], p["be1"])
        h = np.maximum(x @ p["W1"] + p["b1"], 0.0)
        x = x + (h @ p["W2"] + p["b2"])
        out = _np_layer_norm(x, p["g2"], p["be2"])
    return out


# ----------------------------------------------------------------------------------
# Parameter init (matches nn.Linear / nn.LayerNorm defaults, small random offsets init)
# ----------------------------------------------------------------------------------
def init_layer_params(key, d_model, d_ffn, n_heads, n_levels, n_points):
    ks = jax.random.split(key, 6)

    def lin(k, fan_in, fan_out, scale=None):
        if scale is None:
            scale = 1.0 / float(np.sqrt(fan_in))
        kw, kb = jax.random.split(k)
        W = jax.random.uniform(kw, (fan_in, fan_out), jnp.float32, -scale, scale)
        b = jax.random.uniform(kb, (1, fan_out), jnp.float32, -scale, scale)
        return W, b

    Wv, bv = lin(ks[0], d_model, d_model)
    Woff, boff = lin(ks[1], d_model, n_heads * n_levels * n_points * 2, scale=0.05)
    Wattn, battn = lin(ks[2], d_model, n_heads * n_levels * n_points)
    Wout, bout = lin(ks[3], d_model, d_model)
    W1, b1 = lin(ks[4], d_model, d_ffn)
    W2, b2 = lin(ks[5], d_ffn, d_model)
    g1 = jnp.ones((1, d_model), jnp.float32)
    be1 = jnp.zeros((1, d_model), jnp.float32)
    g2 = jnp.ones((1, d_model), jnp.float32)
    be2 = jnp.zeros((1, d_model), jnp.float32)
    return dict(Wv=Wv, bv=bv, Woff=Woff, boff=boff, Wattn=Wattn, battn=battn,
                Wout=Wout, bout=bout, g1=g1, be1=be1, W1=W1, b1=b1,
                W2=W2, b2=b2, g2=g2, be2=be2)


if __name__ == "__main__":
    # Small synthetic configuration (consistent with the Deformable-DETR encoder).
    N = 2
    d_model = 32
    n_heads = 4
    n_points = 4
    d_ffn = 64
    num_layers = 2
    spatial_shapes = ((8, 8), (4, 4))        # two feature levels
    n_levels = len(spatial_shapes)
    level_start = tuple(int(s) for s in
                        np.cumsum([0] + [h * w for h, w in spatial_shapes])[:-1])
    Len = int(sum(h * w for h, w in spatial_shapes))   # 80

    key = jax.random.PRNGKey(0)
    k_src, k_pos, k_vr, k_par = jax.random.split(key, 4)
    src = jax.random.normal(k_src, (N, Len, d_model), jnp.float32)
    pos = 0.1 * jax.random.normal(k_pos, (N, Len, d_model), jnp.float32)
    valid_ratios = jax.random.uniform(k_vr, (N, n_levels, 2), jnp.float32, 0.8, 1.0)

    layer_keys = jax.random.split(k_par, num_layers)
    layer_params = [init_layer_params(k, d_model, d_ffn, n_heads, n_levels, n_points)
                    for k in layer_keys]

    # q_tile=64 exercises both the multi-tile (batch, query-tile) grid and the host-side
    # Len padding path (80 -> 128) even at this toy size.
    out = deformable_transformer_encoder(src, spatial_shapes, level_start,
                                         valid_ratios, layer_params, pos=pos,
                                         n_heads=n_heads, n_points=n_points,
                                         q_tile=64)
    out = jax.block_until_ready(out)

    # Independent f32 NumPy reference (explicit 4-tap bilinear gather, torch conventions):
    # validates both the Pallas lowering and fidelity to the PyTorch MSDeformAttn math.
    reference_points = get_reference_points(spatial_shapes, valid_ratios)
    ref = encoder_forward_numpy_ref(np.asarray(src), spatial_shapes, level_start,
                                    np.asarray(reference_points), layer_params,
                                    np.asarray(pos), n_heads, n_points)

    assert out.shape == (N, Len, d_model)
    assert np.isfinite(np.asarray(out)).all()
    np.testing.assert_allclose(np.asarray(out), ref, rtol=5e-2, atol=5e-2)

    print("KERNEL_OK")
</pallas_src>

<mosaic_0001>
module attributes {stable_mosaic.version = 11 : i64} {
  func.func @k(%arg0: i32, %arg1: i32, %arg2: memref<1x16x128xf32, #tpu.memory_space<vmem>>, %arg3: memref<128x128xf32, #tpu.memory_space<vmem>>, %arg4: memref<1x8x128xf32, #tpu.memory_space<vmem>>, %arg5: memref<1x16x128xf32, #tpu.memory_space<vmem>>) attributes {dimension_semantics = [#tpu.dimension_semantics<arbitrary>, #tpu.dimension_semantics<arbitrary>], iteration_bounds = array<i64: 2, 2>, scalar_prefetch = 0 : i64, scratch_operands = 0 : i64, tpu.core_type = #tpu.core_type<tc>, window_params = [{transform_indices = @transform_0, window_bounds = array<i64: 1, 16, 128>}, {pipeline_mode = #tpu.pipeline_mode<synchronous>, transform_indices = @transform_1, window_bounds = array<i64: 128, 128>}, {pipeline_mode = #tpu.pipeline_mode<synchronous>, transform_indices = @transform_2, window_bounds = array<i64: 1, 8, 128>}, {transform_indices = @transform_3, window_bounds = array<i64: 1, 16, 128>}]} {
    %c0 = arith.constant 0 : index
    %c0_0 = arith.constant 0 : index
    %c0_1 = arith.constant 0 : index
    %0 = vector.load %arg2[%c0, %c0_0, %c0_1] : memref<1x16x128xf32, #tpu.memory_space<vmem>>, vector<1x16x128xf32>
    %1 = vector.shape_cast %0 : vector<1x16x128xf32> to vector<16x128xf32>
    %c0_2 = arith.constant 0 : index
    %c0_3 = arith.constant 0 : index
    %2 = vector.load %arg3[%c0_2, %c0_3] : memref<128x128xf32, #tpu.memory_space<vmem>>, vector<128x128xf32>
    %cst = arith.constant dense<0.000000e+00> : vector<16x128xf32>
    %3 = tpu.matmul %1, %2, %cst {dimension_numbers = #tpu.dot_dimension_numbers<[1], [0], [0], [1], [0, 0, 1, 1], [], []>} : vector<16x128xf32>, vector<128x128xf32>, vector<16x128xf32> -> vector<16x128xf32>
    %c0_4 = arith.constant 0 : index
    %c0_5 = arith.constant 0 : index
    %c0_6 = arith.constant 0 : index
    %4 = vector.load %arg4[%c0_4, %c0_5, %c0_6] : memref<1x8x128xf32, #tpu.memory_space<vmem>>, vector<1x8x128xf32>
    %5 = vector.shape_cast %4 : vector<1x8x128xf32> to vector<8x128xf32>
    %6 = vector.shape_cast %5 : vector<8x128xf32> to vector<1x8x128xf32>
    %cst_7 = arith.constant dense<0.000000e+00> : vector<1xf32>
    %7 = vector.multi_reduction <add>, %6, %cst_7 [1, 2] : vector<1x8x128xf32> to vector<1xf32>
    %8 = vector.shape_cast %7 : vector<1xf32> to vector<1x1x1xf32>
    %9 = vector.extract %8[0, 0, 0] : f32 from vector<1x1x1xf32>
    %10 = vector.broadcast %9 : f32 to vector<16x128xf32>
    %11 = arith.addf %3, %10 : vector<16x128xf32>
    %12 = vector.shape_cast %11 : vector<16x128xf32> to vector<1x16x128xf32>
    %c0_8 = arith.constant 0 : index
    %c0_9 = arith.constant 0 : index
    %c0_10 = arith.constant 0 : index
    %13 = vector.load %arg5[%c0_8, %c0_9, %c0_10] : memref<1x16x128xf32, #tpu.memory_space<vmem>>, vector<1x16x128xf32>
    tpu.vector_store %arg5[%c0_8, %c0_9, %c0_10], %12 {strides = array<i32>} : memref<1x16x128xf32, #tpu.memory_space<vmem>>, vector<1x16x128xf32>,
    return
  }
  func.func @transform_0(%arg0: i32, %arg1: i32) -> (i32, i32, i32) {
    %c0_i32 = arith.constant 0 : i32
    %c0_i32_0 = arith.constant 0 : i32
    return %arg0, %arg1, %c0_i32 : i32, i32, i32
  }
  func.func @transform_1(%arg0: i32, %arg1: i32) -> (i32, i32) {
    %c0_i32 = arith.constant 0 : i32
    %c0_i32_0 = arith.constant 0 : i32
    %c0_i32_1 = arith.constant 0 : i32
    return %c0_i32, %c0_i32_0 : i32, i32
  }
  func.func @transform_2(%arg0: i32, %arg1: i32) -> (i32, i32, i32) {
    %c0_i32 = arith.constant 0 : i32
    %c0_i32_0 = arith.constant 0 : i32
    %c0_i32_1 = arith.constant 0 : i32
    return %arg0, %c0_i32, %c0_i32_0 : i32, i32, i32
  }
  func.func @transform_3(%arg0: i32, %arg1: i32) -> (i32, i32, i32) {
    %c0_i32 = arith.constant 0 : i32
    %c0_i32_0 = arith.constant 0 : i32
    return %arg0, %arg1, %c0_i32 : i32, i32, i32
  }
}

module attributes {stable_mosaic.version = 11 : i64} {
  func.func @_value_proj_kernel(%arg0: i32, %arg1: i32, %arg2: memref<1x64x32xf32, #tpu.memory_space<vmem>>, %arg3: memref<32x32xbf16, #tpu.memory_space<vmem>>, %arg4: memref<1x32xf32, #tpu.memory_space<vmem>>, %arg5: memref<1x64x32xbf16, #tpu.memory_space<vmem>>) attributes {dimension_semantics = [#tpu.dimension_semantics<parallel>, #tpu.dimension_semantics<parallel>], iteration_bounds = array<i64: 2, 2>, scalar_prefetch = 0 : i64, scratch_operands = 0 : i64, tpu.core_type = #tpu.core_type<tc>, window_params = [{transform_indices = @transform_0, window_bounds = array<i64: 1, 64, 32>}, {pipeline_mode = #tpu.pipeline_mode<synchronous>, transform_indices = @transform_1, window_bounds = array<i64: 32, 32>}, {pipeline_mode = #tpu.pipeline_mode<synchronous>, transform_indices = @transform_2, window_bounds = array<i64: 1, 32>}, {transform_indices = @transform_3, window_bounds = array<i64: 1, 64, 32>}]} {
    %c0 = arith.constant 0 : index
    %c0_0 = arith.constant 0 : index
    %c0_1 = arith.constant 0 : index
    %0 = vector.load %arg2[%c0, %c0_0, %c0_1] : memref<1x64x32xf32, #tpu.memory_space<vmem>>, vector<1x64x32xf32>
    %1 = vector.shape_cast %0 : vector<1x64x32xf32> to vector<64x32xf32>
    %2 = arith.truncf %1 : vector<64x32xf32> to vector<64x32xbf16>
    %c0_2 = arith.constant 0 : index
    %c0_3 = arith.constant 0 : index
    %3 = vector.load %arg3[%c0_2, %c0_3] : memref<32x32xbf16, #tpu.memory_space<vmem>>, vector<32x32xbf16>
    %cst = arith.constant dense<0.000000e+00> : vector<64x32xf32>
    %4 = tpu.matmul %2, %3, %cst {dimension_numbers = #tpu.dot_dimension_numbers<[1], [0], [0], [1], [0, 0, 1, 1], [], []>} : vector<64x32xbf16>, vector<32x32xbf16>, vector<64x32xf32> -> vector<64x32xf32>
    %c0_4 = arith.constant 0 : index
    %c0_5 = arith.constant 0 : index
    %5 = vector.load %arg4[%c0_4, %c0_5] : memref<1x32xf32, #tpu.memory_space<vmem>>, vector<1x32xf32>
    %6 = vector.broadcast %5 : vector<1x32xf32> to vector<64x32xf32>
    %7 = arith.addf %4, %6 : vector<64x32xf32>
    %8 = arith.truncf %7 : vector<64x32xf32> to vector<64x32xbf16>
    %c0_6 = arith.constant 0 : index
    %c0_7 = arith.constant 0 : index
    %c0_8 = arith.constant 0 : index
    %9 = vector.load %arg5[%c0_6, %c0_7, %c0_8] : memref<1x64x32xbf16, #tpu.memory_space<vmem>>, vector<1x64x32xbf16>
    %10 = vector.shape_cast %9 : vector<1x64x32xbf16> to vector<64x32xbf16>
    %11 = vector.shape_cast %8 : vector<64x32xbf16> to vector<1x64x32xbf16>
    tpu.vector_store %arg5[%c0_6, %c0_7, %c0_8], %11 {strides = array<i32>} : memref<1x64x32xbf16, #tpu.memory_space<vmem>>, vector<1x64x32xbf16>,
    return
  }
  func.func @transform_0(%arg0: i32, %arg1: i32) -> (i32, i32, i32) {
    %c0_i32 = arith.constant 0 : i32
    %c0_i32_0 = arith.constant 0 : i32
    return %arg0, %arg1, %c0_i32 : i32, i32, i32
  }
  func.func @transform_1(%arg0: i32, %arg1: i32) -> (i32, i32) {
    %c0_i32 = arith.constant 0 : i32
    %c0_i32_0 = arith.constant 0 : i32
    %c0_i32_1 = arith.constant 0 : i32
    return %c0_i32, %c0_i32_0 : i32, i32
  }
  func.func @transform_2(%arg0: i32, %arg1: i32) -> (i32, i32) {
    %c0_i32 = arith.constant 0 : i32
    %c0_i32_0 = arith.constant 0 : i32
    %c0_i32_1 = arith.constant 0 : i32
    return %c0_i32, %c0_i32_0 : i32, i32
  }
  func.func @transform_3(%arg0: i32, %arg1: i32) -> (i32, i32, i32) {
    %c0_i32 = arith.constant 0 : i32
    %c0_i32_0 = arith.constant 0 : i32
    return %arg0, %arg1, %c0_i32 : i32, i32, i32
  }
}

</mosaic_0001>

<bundles_post_ra>
// kernel: tpu_custom_call.1
= control target key start
LH: loop header
LB: loop body
LE: loop exit
PB: predicated region body
PF: predicated region fallthrough
CT: control target
= control target key end

     0   :  { %s1283_s0 = inlined_call_operand.hbm [shape: f32[2,32,128], index: 0, kind: input, shape index: {}]   ;;  %s1284_s1 = inlined_call_operand.hbm [shape: f32[128,128], index: 1, kind: input, shape index: {}]   ;;  %s1285_s2 = inlined_call_operand.hbm [shape: f32[2,8,128], index: 2, kind: input, shape index: {}]   ;;  %s1286_s3 = inlined_call_operand.hbm [shape: f32[2,32,128], index: 3, kind: output, shape index: {}]  }
   0x1   :  { %1306 = sst [smem:[#allocation20_spill]] %s1284_s1 }
   0x2   :  { %1307 = sst [smem:[#allocation21_spill]] %s1285_s2 }
   0x3   :  { %1308 = sst [smem:[#allocation22_spill]] %s1286_s3 }
   0x4   :  { %8 = vsyncpa [#allocation3], 0 }
   0x5   :  { %10 = vsyncpa [#allocation3 + $0x1], 0 }
   0x6   :  { %11 = vsyncpa [#allocation6], 0 }
   0x7   :  { %12 = vsyncpa [#allocation4], 0 }
   0x8   :  { %14 = vsyncpa [#allocation4 + $0x1], 0  ;;  %s954_s12 = smov 0   ;;  %s956_s13 = smov 0  }
   0x9   :  { %s958_s14 = smov 0   ;;  %s960_s15 = smov 0  }
   0xa   :  { %s962_s16 = smov 0   ;;  %s964_s17 = smov 0  }
   0xb   :  { %s966_s18 = smov 0   ;;  %s968_s19 = smov 0  }
   0xc   :  { %s970_s20 = smov 0   ;;  %s972_s21 = smov 0  }
   0xd   :  { %s974_s22 = smov 0  }
   0xe LB: > { %1309 = sst [smem:[#allocation13_spill]] %s888_s13  ;;  %s476_s23 = sadd.s32 4294967295, %s924_s22   ;;  %s924_s22 = sphi %s974_s22, %s20_s22   ;;  %s920_s21 = sphi %s972_s21, %s1354_s21   ;;  %s916_s20 = sphi %s970_s20, %s1347_s20   ;;  %s912_s19 = sphi %s968_s19, %s1353_s19   ;;  %s908_s18 = sphi %s966_s18, %s1346_s18   ;;  %s904_s17 = sphi %s964_s17, %s1352_s17   ;;  %s900_s16 = sphi %s962_s16, %s1351_s16   ;;  %s896_s15 = sphi %s960_s15, %s1350_s15   ;;  %s892_s14 = sphi %s958_s14, %s1349_s14   ;;  %s888_s13 = sphi %s956_s13, %s1348_s13   ;;  %s884_s12 = sphi %s954_s12, %s1345_s12  }
   0xf   : > { %1310 = sst [smem:[#allocation14_spill]] %s896_s15  ;;  %s477_s24 = sadd.s32 4294967294, %s924_s22  }
  0x10   : > { %1311 = sst [smem:[#allocation15_spill]] %s912_s19  ;;  %p54_p0 = scmp.ne.s32.totalorder %s900_s16, %s896_s15 }
  0x11   : > { %1312 = sst [smem:[#allocation16_spill]] %s916_s20  ;;  %p1013_p1 = scmp.eq.s32.totalorder %s476_s23, 0 }
  0x12   : > { %p1017_p2 = scmp.eq.s32.totalorder %s476_s23, 3  ;;  %p133_p3 = scmp.eq.s32.totalorder %s477_s24, 3 }
  0x13   : > { %s1313_s25 = scalar_select %p1013_p1, 1, 0 }
  0x14   : > { %s1314_s26 = scalar_select %p1017_p2, 1, 0 }
  0x15   : > { %p1023_p4 = por %p1013_p1, %p54_p0  ;;  %p478_p5 = scmp.ge.s32.totalorder %s924_s22, 1 }
  0x16   : > { %p1028_p6 = por %p133_p3, %p54_p0  ;;  %p140_p7 = scmp.lt.s32.totalorder %s924_s22, 5 }
  0x17   : > { %s1315_s27 = scalar_select %p1023_p4, 1, 0 }
  0x18   : > { %s1316_s28 = scalar_select %p1028_p6, 1, 0 }
  0x19   : > { %p1033_p8 = pnand %p478_p5, %p140_p7  ;;  %s926_s30 = smov [#allocation5]  }
  0x1a   : > { %1317 = sst [smem:[#allocation17_spill]] %s1316_s28  ;;  %s152_s4 = sshll.u32 %s926_s30, 4  ;;  %s153_s4 = int_to_ptr.vmem [resolvable:$true] %s152_s4 }
  0x1b   : > { %s1318_s29 = scalar_select %p1033_p8, 1, 0 }
  0x1c   : > { %p1287_p9 = pneg %p1033_p8  ;;  %s1320_s1 = sld [smem:[#allocation20_spill]] }
  0x1e   : > { %p1044_p10 = pnand %p1287_p9, %p1013_p1 }
  0x20   : > { %p708_p12 = pneg %p1044_p10 }
  0x22   : > { %s706_s8 = scalar_lea.hbm %s1320_s1, 2048 }
  0x23   : > { %p707_p11 = scmp.ne.s32.totalorder %s1320_s1, %s706_s8  ;;  %p713_p3 = scmp.lt.u32.totalorder %s706_s8, %s1320_s1 }
  0x25   : > { %p709_p13 = pnand %p708_p12, %p707_p11 }
  0x27   : > { %p710_p0 = pneg %p709_p13 }
  0x29   : > { %p715_p5 = pnand %p713_p3, %p710_p0 }
  0x2b   : > { %718 = shalt.err (!%p715_p5)
}
  0x2c   : > { %s719_s24 = scalar_lea.vmem %s153_s4, 2048  ;;  %p727_p4 = scmp.lt.s32.totalorder %s153_s4, %s153_s4 }
  0x2d   : > { %p720_p7 = scmp.ne.s32.totalorder %s153_s4, %s719_s24  ;;  %p728_p2 = scmp.lt.s32.totalorder %s719_s24, %s719_s24 }
  0x2f   : > { %p722_p9 = pnand %p720_p7, %p708_p12  ;;  %p729_p8 = por %p728_p2, %p727_p4 }
  0x31   : > { %p723_p6 = pneg %p722_p9 }
  0x33   : > { %p730_p1 = pnand %p729_p8, %p723_p6 }
  0x35   : > { %733 = shalt.err (!%p730_p1)
}
  0x36   : > { %s1296_s30 = smov 128   ;;  %s1297_s6 = smov 8  }
  0x37   : > { %596 = dma.hbm_to_vmem [thread:$0]  (!%p1044_p10), %s1320_s1, 2048, %s153_s4, [#allocation6], %s1296_s30, %s1296_s30, %s1297_s6  }
  0x38   : > { %s480_s9 = sshll.u32 %s912_s19, 7  ;;  %p101_p2 = scmp.ne.s32.totalorder %s888_s13, %s884_s12 }
  0x39   : > { %s1321_s2 = sld [smem:[#allocation21_spill]]  ;;  %p1322_p1 = scmp.ne.s32.totalorder %s1313_s25, 0 }
  0x3a   : > { %s929_s5 = smov [#allocation7]   ;;  %p1324_p6 = scmp.ne.s32.totalorder %s1318_s29, 0 }
  0x3b   : > { %p1075_p4 = por %p101_p2, %p1322_p1  ;;  %s168_s28 = sshll.u32 %s929_s5, 4  ;;  %s169_s28 = int_to_ptr.vmem [resolvable:$true] %s168_s28 }
  0x3c   : > { %p1325_p8 = pneg %p1324_p6 }
  0x3d   : > { %s1323_s24 = scalar_select %p1075_p4, 1, 0 }
  0x3e   : > { %p1084_p9 = pnand %p1325_p8, %p1075_p4 }
  0x3f   : > { %s166_s23 = scalar_lea.hbm %s1321_s2, %s480_s9  ;;  %s739_s9 = scalar_lea.hbm %s1321_s2, 256 }
  0x40   : > { %s734_s12 = scalar_lea.hbm %s166_s23, 128  ;;  %p736_p11 = pneg %p1084_p9 }
  0x41   : > { %p735_p10 = scmp.ne.s32.totalorder %s166_s23, %s734_s12  ;;  %p740_p0 = scmp.lt.u32.totalorder %s166_s23, %s1321_s2 }
  0x42   : > { %p741_p3 = scmp.lt.u32.totalorder %s739_s9, %s734_s12  ;;  %p743_p7 = scmp.lt.u32.totalorder %s734_s12, %s166_s23 }
  0x43   : > { %p737_p12 = pnand %p736_p11, %p735_p10 }
  0x44   : > { %p742_p5 = por %p741_p3, %p740_p0 }
  0x45   : > { %p738_p13 = pneg %p737_p12 }
  0x46   : > { %p744_p2 = por %p743_p7, %p742_p5 }
  0x48   : > { %p745_p1 = pnand %p744_p2, %p738_p13 }
  0x4a   : > { %748 = shalt.err (!%p745_p1)
}
  0x4b   : > { %s749_s5 = scalar_lea.vmem %s169_s28, 128  ;;  %p757_p4 = scmp.lt.s32.totalorder %s169_s28, %s169_s28 }
  0x4c   : > { %p750_p8 = scmp.ne.s32.totalorder %s169_s28, %s749_s5  ;;  %p758_p6 = scmp.lt.s32.totalorder %s749_s5, %s749_s5 }
  0x4e   : > { %p752_p10 = pnand %p750_p8, %p736_p11  ;;  %p759_p0 = por %p758_p6, %p757_p4 }
  0x50   : > { %p753_p12 = pneg %p752_p10 }
  0x52   : > { %p760_p3 = pnand %p759_p0, %p753_p12 }
  0x54   : > { %763 = shalt.err (!%p760_p3)
}
  0x55   : > { %599 = dma.hbm_to_vmem [thread:$0]  (!%p1084_p9), %s166_s23, 128, %s169_s28, [#allocation6]  }
  0x56   : > { %s29_s12 = sadd.s32 1, %s916_s20  ;;  %s32_s7 = sadd.s32 1, %s920_s21 }
  0x57   : > { %p30_p4 = scmp.ge.s32.totalorder %s29_s12, 2  ;;  %s41_s8 = sadd.s32 1, %s904_s17 }
  0x58   : > { %p48_p6 = scmp.ne.s32.totalorder %s904_s17, %s900_s16  ;;  %p49_p11 = scmp.eq.s32.totalorder %s924_s22, 0 }
  0x59   : > { %s1356_s12 = smov (%p30_p4, %s29_s12), 0  ;;  %s1358_s7 = smov (!%p30_p4, %s32_s7), %s920_s21 }
  0x5a   : > { %1327 = sst [smem:[#allocation18_spill]] %s1356_s12  ;;  %s37_s4 = ssub.s32 %s916_s20, %s1356_s12 }
  0x5b   : > { %p1115_p13 = por %p49_p11, %p48_p6  ;;  %p34_p9 = scmp.ge.s32.totalorder %s1358_s7, 2 }
  0x5c   : > { %s88_s28 = sadd.s32 1, %s892_s14  ;;  %p1329_p5 = scmp.ne.s32.totalorder %s1314_s26, 0 }
  0x5d   : > { %p609_p2 = scmp.lt.s32.totalorder %s924_s22, 4  ;;  %s1360_s7 = smov (%p34_p9, %s1358_s7), 0 }
  0x5e   : > { %p1122_p7 = por %p1329_p5, %p48_p6  ;;  %s179_s10 = sand.u32 1, %s904_s17  }
  0x5f   : > { %s483_s11 = sshll.u32 %s916_s20, 1  ;;  %s36_s5 = ssub.s32 %s920_s21, %s1360_s7 }
  0x60   : > { %s1330_s23 = scalar_select %p1122_p7, 1, 0 }
  0x61   : > { %s38_s30 = sor.u32 %s37_s4, %s36_s5  ;;  %p86_p1 = scmp.eq.s32.totalorder %s36_s5, 0 }
  0x62   : > { %1331 = sst [smem:[#allocation19_spill]] %s1330_s23  ;;  %p39_p8 = scmp.eq.s32.totalorder %s38_s30, 0 }
  0x63   : > { %s482_s6 = sshll.u32 %s179_s10, 4  ;;  %s484_s2 = sshll.u32 %s920_s21, 2 }
  0x64   : > { %s1134_s1 = scalar_select %p86_p1, %s892_s14, %s88_s28  }
  0x65   : > { %s1137_s26 = scalar_select %p39_p8, %s904_s17, %s41_s8  }
  0x66   : > { %s189_s12 = sadd.s32 %s484_s2, %s483_s11  ;;  %s183_s13 = scalar_lea.vmem [#allocation2], %s482_s6 }
  0x67   : > { %s192_s15 = sshll.u32 %s183_s13, 4  ;;  %s485_s3 = sshll.u32 %s189_s12, 7  ;;  %s1140_s15 = int_to_ptr.vmem [resolvable:$true] %s192_s15 }
  0x68   : > { %s1145_s20 = scalar_lea.hbm %s1283_s0, %s485_s3  ;;  %p1151_p10 = pnand %p609_p2, %p1115_p13 }
  0x69   : > { %s1155_s2 = scalar_lea.sflag [#allocation3], %s179_s10  ;;  %s764_s13 = scalar_lea.hbm %s1145_s20, 256 }
  0x6a   : > { %p765_p12 = scmp.ne.s32.totalorder %s1145_s20, %s764_s13  ;;  %p766_p0 = pneg %p1151_p10 }
  0x6b   : > { %s769_s6 = scalar_lea.hbm %s1283_s0, 1024  ;;  %p770_p6 = scmp.lt.u32.totalorder %s1145_s20, %s1283_s0 }
  0x6c   : > { %p767_p3 = pnand %p766_p0, %p765_p12  ;;  %p771_p11 = scmp.lt.u32.totalorder %s769_s6, %s764_s13 }
  0x6d   : > { %p773_p9 = scmp.lt.u32.totalorder %s764_s13, %s1145_s20 }
  0x6e   : > { %p768_p4 = pneg %p767_p3  ;;  %p772_p13 = por %p771_p11, %p770_p6 }
  0x70   : > { %p774_p5 = por %p773_p9, %p772_p13 }
  0x72   : > { %p775_p2 = pnand %p774_p5, %p768_p4 }
  0x74   : > { %778 = shalt.err (!%p775_p2)
}
  0x75   : > { %s779_s4 = scalar_lea.vmem %s1140_s15, 256  ;;  %s930_s9 = smov [#allocation2]  }
  0x76   : > { %p780_p1 = scmp.ne.s32.totalorder %s1140_s15, %s779_s4  ;;  %s784_s28 = sshll.u32 %s930_s9, 4  ;;  %s785_s28 = int_to_ptr.vmem [resolvable:$false] %s784_s28 }
  0x77   : > { %s786_s23 = scalar_lea.vmem %s785_s28, 512  ;;  %p787_p3 = scmp.lt.s32.totalorder %s1140_s15, %s785_s28 }
  0x78   : > { %p782_p8 = pnand %p780_p1, %p766_p0  ;;  %p788_p6 = scmp.lt.s32.totalorder %s786_s23, %s779_s4 }
  0x7a   : > { %p783_p12 = pneg %p782_p8  ;;  %p789_p11 = por %p788_p6, %p787_p3 }
  0x7c   : > { %p790_p13 = pnand %p789_p11, %p783_p12 }
  0x7e   : > { %793 = shalt.err (!%p790_p13)
}
  0x7f   : > { %s1333_s10 = smov 8   ;;  %s1334_s11 = smov 128  }
  0x80   : > { %603 = dma.hbm_to_vmem [thread:$0]  (!%p1151_p10), %s1145_s20, 256, %s1140_s15, %s1155_s2, %s1334_s11, %s1334_s11, %s1333_s10  }
  0x81   : > { %p1335_p0 = scmp.ne.s32.totalorder %s1318_s29, 0 }
  0x82   : > { %s1189_s5 = sand.u32 (!%p1335_p0), 1, %s900_s16   ;;  %p1336_p4 = scmp.ne.s32.totalorder (!%p1335_p0), %s1315_s27, 0 }
  0x83   : > { %204 = sbr.rel (%p1335_p0) target bundleno = 410 (0x19a), region = 32  ;;  %s487_s13 = sshll.u32 (!%p1335_p0), %s1189_s5, 4 }
  0x84   : > { %s207_s3 = scalar_lea.sflag (!%p1335_p0), [#allocation3], %s1189_s5  ;;  %s1195_s30 = scalar_lea.vmem (!%p1335_p0), [#allocation2], %s487_s13 }
  0x8a   : > { %867 = dma.done.wait (%p1336_p4), %s207_s3, 256  }
  0x8b   : > { %869 = vsyncadd (%p1336_p4), %s207_s3, 4294967040  ;;  %p1337_p10 = scmp.ne.s32.totalorder %s1313_s25, 0 }
  0x8d   : > { %871 = dma.done.wait (%p1337_p10), [#allocation6], 2048  }
  0x8e   : > { %873 = vsyncadd (%p1337_p10), [#allocation6], 4294965248  ;;  %p1338_p9 = scmp.ne.s32.totalorder %s1323_s24, 0 }
  0x90   : > { %875 = dma.done.wait (%p1338_p9), [#allocation6], 128  }
  0x91   : > { %877 = vsyncadd (%p1338_p9), [#allocation6], 4294967168  ;;  %v245_v0 = vld [vmem:[#allocation5] sm:$0xff]  ;;  %v246_v1 = vld [vmem:[#allocation5 + $0x8] sm:$0xff]  ;;  %s1339_s15 = sld [smem:[#allocation15_spill]]  ;;  %s491_s20 = sshll.u32 %s908_s18, 1 }
  0x92   : > { %v247_v2 = vld [vmem:[#allocation5 + $0x10] sm:$0xff]  ;;  %v549_v3 = vpack.c.bf16 %v246_v1, %v245_v0  ;;  %v248_v4 = vld [vmem:[#allocation5 + $0x18] sm:$0xff]  ;;  %v249_v6 = vld [vmem:[#allocation5 + $0x20] sm:$0xff]  ;;  %s240_s2 = scalar_lea.vmem [#allocation8], %s487_s13  ;;  %s1341_s8 = sld [smem:[#allocation22_spill]] }
  0x93   : > { %v553_v5 = vpack.c.bf16 %v248_v4, %v247_v2  ;;  %v250_v7 = vld [vmem:[#allocation5 + $0x28] sm:$0xff]  ;;  %v243_v9 = vld [vmem:[%s1195_s30] sm:$0xff]  ;;  %v252_v11 = vld [vmem:[#allocation5 + $0x38] sm:$0xff]  ;;  %s365_s19 = sshll.u32 %s240_s2, 4  ;;  %s350_s9 = scalar_lea.sflag [#allocation4], %s1189_s5  ;;  %s1215_s19 = int_to_ptr.vmem [resolvable:$true] %s365_s19 }
  0x94   : > { %550 = vmatprep.subr.bf16.mxu0 %v549_v3  ;;  %v557_v8 = vpack.c.bf16 %v250_v7, %v249_v6  ;;  %v251_v10 = vld [vmem:[#allocation5 + $0x30] sm:$0xff]  ;;  %546 = vmatprep.mubr.f32.mxu0 %v243_v9  ;;  %v261_v12 = vld [vmem:[#allocation7] sm:$0xff]  ;;  %v254_v15 = vld [vmem:[#allocation5 + $0x48] sm:$0xff]  ;;  %s794_s28 = scalar_lea.vmem %s1215_s19, 256  ;;  %s931_s23 = smov [#allocation8]  }
  0x95   : > { %552 = vmatpush3.bf16.msra.mxu0 %v549_v3  ;;  %262 = vadd.xlane.f32.xlu0 %v261_v12  ;;  %v561_v13 = vpack.c.bf16 %v252_v11, %v251_v10  ;;  %v253_v14 = vld [vmem:[#allocation5 + $0x40] sm:$0xff]  ;;  %v255_v17 = vld [vmem:[#allocation5 + $0x50] sm:$0xff]  ;;  %v256_v18 = vld [vmem:[#allocation5 + $0x58] sm:$0xff]  ;;  %p795_p5 = scmp.ne.s32.totalorder %s1215_s19, %s794_s28  ;;  %s798_s10 = sshll.u32 %s931_s23, 4  ;;  %s799_s10 = int_to_ptr.vmem [resolvable:$false] %s798_s10 }
  0x96   : > { %554 = vmatprep.subr.bf16.mxu0 %v553_v5  ;;  %v565_v16 = vpack.c.bf16 %v254_v15, %v253_v14  ;;  %v569_v19 = vpack.c.bf16 %v256_v18, %v255_v17  ;;  %v257_v20 = vld [vmem:[#allocation5 + $0x60] sm:$0xff]  ;;  %v258_v21 = vld [vmem:[#allocation5 + $0x68] sm:$0xff]  ;;  %v259_v23 = vld [vmem:[#allocation5 + $0x70] sm:$0xff]  ;;  %s800_s11 = scalar_lea.vmem %s799_s10, 512  ;;  %p801_p8 = scmp.lt.s32.totalorder %s1215_s19, %s799_s10 }
  0x97   : > { %v573_v22 = vpack.c.bf16 %v258_v21, %v257_v20  ;;  %v260_v24 = vld [vmem:[#allocation5 + $0x78] sm:$0xff]  ;;  %s492_s25 = sshll.u32 %s1339_s15, 2  ;;  %p796_p2 = pnand %p795_p5, %p1122_p7 }
  0x98   : > { %v577_v25 = vpack.c.bf16 %v260_v24, %v259_v23  ;;  %v244_v26 = vld [vmem:[%s1195_s30 + $0x8] sm:$0xff]  ;;  %s362_s27 = sadd.s32 %s492_s25, %s491_s20  ;;  %p802_p12 = scmp.lt.s32.totalorder %s800_s11, %s794_s28 }
  0x99   : > { %556 = vmatpush3.bf16.msra.mxu0 %v553_v5  ;;  %s493_s6 = sshll.u32 %s362_s27, 7  ;;  %p797_p1 = pneg %p796_p2 }
  0x9a   : > { %558 = vmatprep.subr.bf16.mxu0 %v557_v8  ;;  %s1220_s4 = scalar_lea.hbm %s1341_s8, %s493_s6  ;;  %p803_p3 = por %p802_p12, %p801_p8 }
  0x9c   : > { %p804_p6 = pnand %p803_p3, %p797_p1 }
  0x9d   : > { %560 = vmatpush3.bf16.msra.mxu0 %v557_v8 }
  0x9e   : > { %562 = vmatprep.subr.bf16.mxu0 %v561_v13 }
  0xa1   : > { %564 = vmatpush3.bf16.msra.mxu0 %v561_v13 }
  0xa2   : > { %566 = vmatprep.subr.bf16.mxu0 %v565_v16 }
  0xa5   : > { %568 = vmatpush3.bf16.msra.mxu0 %v565_v16 }
  0xa6   : > { %570 = vmatprep.subr.bf16.mxu0 %v569_v19 }
  0xa9   : > { %572 = vmatpush3.bf16.msra.mxu0 %v569_v19 }
  0xaa   : > { %574 = vmatprep.subr.bf16.mxu0 %v573_v22 }
  0xad   : > { %576 = vmatpush3.bf16.msra.mxu0 %v573_v22 }
  0xae   : > { %578 = vmatprep.subr.bf16.mxu0 %v577_v25 }
  0xb1   : > { %580 = vmatpush3.bf16.msra.mxu0 %v577_v25 }
  0xb4   : > { %547 = vmatmul.mubr.f32.vlgmr.msra.gmra.mrb[0].mxu0 %v244_v26 }
 0x122   : > { %v263_v27 = vpop.xlane.xlu0 %262 }
 0x123   : > { %v264_v28 = vrot.slane %v263_v27, 4 }
 0x125   : > { %v265_v29 = vadd.f32 %v264_v28, %v263_v27 }
 0x127   : > { %v266_v30 = vrot.slane %v265_v29, 2 }
 0x129   : > { %v267_v31 = vadd.f32 %v266_v30, %v265_v29 }
 0x12b   : > { %v268_v32 = vrot.slane %v267_v31, 1 }
 0x12d   : > { %v269_v33 = vadd.f32 %v268_v32, %v267_v31 }
 0x12f   : > { %581 = vpush %v269_v33 }
 0x160   : > { %s582_s29 = spop %581 }
 0x161   : > { %v271_v34 = vstv %s582_s29 }
 0x187   : > { %v548_v35 = vpop.f32.mrb[0].mxu0 }
 0x188   : > { %v344_v36 = vadd.f32 %v548_v35, %v271_v34  ;;  %v338_v37 = vpop.f32.mrb[1].mxu0 }
 0x189   : > { %v339_v38 = vadd.f32 %v338_v37, %v271_v34 }
 0x18a   : > { %348 = vst [vmem:[%s240_s2 + $0x8] sm:$0xff] %v344_v36 }
 0x18b   : > { %347 = vst [vmem:[%s240_s2] sm:$0xff] %v339_v38 }
 0x18c   : > { %807 = shalt.err (!%p804_p6)
}
 0x18d   : > { %s808_s13 = scalar_lea.hbm %s1220_s4, 256  ;;  %s812_s15 = scalar_lea.hbm %s1341_s8, 1024 }
 0x18e   : > { %p809_p11 = scmp.ne.s32.totalorder %s1220_s4, %s808_s13  ;;  %p813_p4 = scmp.lt.u32.totalorder %s1220_s4, %s1341_s8 }
 0x18f   : > { %p814_p10 = scmp.lt.u32.totalorder %s812_s15, %s808_s13  ;;  %p816_p5 = scmp.lt.u32.totalorder %s808_s13, %s1220_s4 }
 0x190   : > { %p810_p13 = pnand %p809_p11, %p1122_p7 }
 0x191   : > { %p815_p9 = por %p814_p10, %p813_p4 }
 0x192   : > { %p811_p0 = pneg %p810_p13 }
 0x193   : > { %p817_p2 = por %p816_p5, %p815_p9 }
 0x195   : > { %p818_p1 = pnand %p817_p2, %p811_p0 }
 0x197   : > { %821 = shalt.err (!%p818_p1)
}
 0x198   : > { %s932_s27 = smov 128   ;;  %s933_s29 = smov 8  }
 0x199   : > { %591 = dma.vmem_to_hbm [thread:$0]  (%p1122_p7), %s1215_s19, 256, %s1220_s4, %s350_s9, %s932_s27, %s932_s27, %s933_s29  }
 0x19a PF: > { %s1342_s2 = sld [smem:[#allocation14_spill]]  ;;  %s1343_s6 = sld [smem:[#allocation17_spill]] }
 0x19b   : > { %p611_p8 = scmp.ge.s32.totalorder %s924_s22, 2 }
 0x1a0   : > { %s380_s12 = sand.u32 1, %s1342_s2   ;;  %p1344_p12 = scmp.ne.s32.totalorder %s1343_s6, 0 }
 0x1a1   : > { %s381_s18 = scalar_lea.sflag [#allocation4], %s380_s12 }
 0x1a2   : > { %p605_p3 = pnand %p611_p8, %p1344_p12 }
 0x1a4   : > { %879 = dma.done.wait (!%p605_p3), %s381_s18, 256  }
 0x1a5   : > { %881 = vsyncadd (!%p605_p3), %s381_s18, 4294967040  ;;  %s20_s22 = sadd.s32 1, %s924_s22   ;;  %s1345_s12 = sld [smem:[#allocation13_spill]] }
 0x1a6   : > { %p17_p6 = scmp.ge.s32.totalorder %s20_s22, 6   ;;  %s1346_s18 = sld [smem:[#allocation16_spill]] }
 0x1a7   : > { %s1347_s20 = sld [smem:[#allocation18_spill]]  ;;  %s1348_s13 = smov %s892_s14 }
 0x1a8   : > { %s1349_s14 = smov %s1134_s1  ;;  %s1350_s15 = smov %s900_s16 }
 0x1a9   : > { %s1351_s16 = smov %s904_s17  ;;  %s1352_s17 = smov %s1137_s26 }
 0x1aa   : > { %s1353_s19 = smov %s920_s21  ;;  %s1354_s21 = smov %s1360_s7 }
 0x1ab   :  { %19 = sbr.rel (!%p17_p6) target bundleno = 14 (0xe), region = 86 }
 0x1b2   :  { %386 = vsyncpa [#allocation3], 1 }
 0x1b3   :  { %388 = vsyncpa [#allocation3 + $0x1], 1 }
 0x1b4   :  { %389 = vsyncpa [#allocation6], 1 }
 0x1b5   :  { %390 = vsyncpa [#allocation4], 1 }
 0x1b6   :  { %392 = vsyncpa [#allocation4 + $0x1], 1 }

// kernel: tpu_custom_call.1
= control target key start
LH: loop header
LB: loop body
LE: loop exit
PB: predicated region body
PF: predicated region fallthrough
CT: control target
= control target key end

     0   :  { %s1202_s0 = inlined_call_operand.hbm [shape: f32[2,128,32], index: 0, kind: input, shape index: {}]   ;;  %s1203_s1 = inlined_call_operand.hbm [shape: bf16[32,32], index: 1, kind: input, shape index: {}]   ;;  %s1204_s2 = inlined_call_operand.hbm [shape: f32[1,32], index: 2, kind: input, shape index: {}]   ;;  %s1205_s3 = inlined_call_operand.hbm [shape: bf16[2,128,32], index: 3, kind: output, shape index: {}]  }
   0x1   :  { %1213 = sst [smem:[#allocation15_spill]] %s1203_s1 }
   0x2   :  { %1214 = sst [smem:[#allocation16_spill]] %s1204_s2 }
   0x3   :  { %8 = vsyncpa [#allocation3], 0 }
   0x4   :  { %10 = vsyncpa [#allocation3 + $0x1], 0 }
   0x5   :  { %11 = vsyncpa [#allocation6], 0 }
   0x6   :  { %12 = vsyncpa [#allocation4], 0 }
   0x7   :  { %14 = vsyncpa [#allocation4 + $0x1], 0  ;;  %s909_s12 = smov 0   ;;  %s911_s13 = smov 0  }
   0x8   :  { %s913_s14 = smov 0   ;;  %s915_s15 = smov 0  }
   0x9   :  { %s917_s16 = smov 0   ;;  %s919_s17 = smov 0  }
   0xa   :  { %s921_s18 = smov 0   ;;  %s923_s19 = smov 0  }
   0xb LB: > { %1215 = sst [smem:[#allocation12_spill]] %s849_s12  ;;  %s516_s20 = sadd.s32 4294967295, %s877_s19   ;;  %s877_s19 = sphi %s923_s19, %s20_s19   ;;  %s873_s18 = sphi %s921_s18, %s1243_s18   ;;  %s869_s17 = sphi %s919_s17, %s1242_s17   ;;  %s865_s16 = sphi %s917_s16, %s1241_s16   ;;  %s861_s15 = sphi %s915_s15, %s1240_s15   ;;  %s857_s14 = sphi %s913_s14, %s1239_s14   ;;  %s853_s13 = sphi %s911_s13, %s1238_s13   ;;  %s849_s12 = sphi %s909_s12, %s1237_s12  }
   0xc   : > { %s517_s21 = sadd.s32 4294967294, %s877_s19   ;;  %p54_p0 = scmp.ne.s32.totalorder %s853_s13, %s849_s12 }
   0xd   : > { %p953_p1 = scmp.eq.s32.totalorder %s516_s20, 0  ;;  %p957_p2 = scmp.eq.s32.totalorder %s516_s20, 3 }
   0xe   : > { %p128_p3 = scmp.eq.s32.totalorder %s517_s21, 3  ;;  %p518_p5 = scmp.ge.s32.totalorder %s877_s19, 1 }
   0xf   : > { %s1216_s22 = scalar_select %p953_p1, 1, 0 }
  0x10   : > { %s1217_s23 = scalar_select %p957_p2, 1, 0 }
  0x11   : > { %p963_p4 = por %p953_p1, %p54_p0  ;;  %p968_p6 = por %p128_p3, %p54_p0 }
  0x12   : > { %p135_p7 = scmp.lt.s32.totalorder %s877_s19, 5  ;;  %s879_s27 = smov [#allocation5]  }
  0x13   : > { %s1218_s24 = scalar_select %p963_p4, 1, 0 }
  0x14   : > { %s1219_s25 = scalar_select %p968_p6, 1, 0 }
  0x15   : > { %p973_p8 = pnand %p518_p5, %p135_p7  ;;  %s147_s28 = sshll.u32 %s879_s27, 4  ;;  %s148_s28 = int_to_ptr.vmem [resolvable:$true] %s147_s28 }
  0x16   : > { %1220 = sst [smem:[#allocation13_spill]] %s1219_s25  ;;  %s880_s30 = smov [#allocation7]  }
  0x17   : > { %s1221_s26 = scalar_select %p973_p8, 1, 0 }
  0x18   : > { %p594_p9 = pneg %p973_p8  ;;  %s161_s4 = sshll.u32 %s880_s30, 4  ;;  %s985_s4 = int_to_ptr.vmem [resolvable:$true] %s161_s4 }
  0x19   : > { %s1223_s1 = sld [smem:[#allocation15_spill]] }
  0x1a   : > { %p981_p10 = pnand %p594_p9, %p953_p1 }
  0x1c   : > { %p691_p12 = pneg %p981_p10 }
  0x1f   : > { %s689_s7 = scalar_lea.hbm %s1223_s1, 256 }
  0x20   : > { %p690_p11 = scmp.ne.s32.totalorder %s1223_s1, %s689_s7  ;;  %p696_p3 = scmp.lt.u32.totalorder %s689_s7, %s1223_s1 }
  0x22   : > { %p692_p13 = pnand %p691_p12, %p690_p11 }
  0x24   : > { %p693_p0 = pneg %p692_p13 }
  0x26   : > { %p698_p5 = pnand %p696_p3, %p693_p0 }
  0x28   : > { %701 = shalt.err (!%p698_p5)
}
  0x29   : > { %s702_s20 = scalar_lea.vmem %s148_s28, 256  ;;  %p710_p1 = scmp.lt.s32.totalorder %s148_s28, %s148_s28 }
  0x2a   : > { %p703_p7 = scmp.ne.s32.totalorder %s148_s28, %s702_s20  ;;  %p711_p4 = scmp.lt.s32.totalorder %s702_s20, %s702_s20 }
  0x2c   : > { %p705_p9 = pnand %p703_p7, %p691_p12  ;;  %p712_p8 = por %p711_p4, %p710_p1 }
  0x2e   : > { %p706_p6 = pneg %p705_p9 }
  0x30   : > { %p713_p2 = pnand %p712_p8, %p706_p6 }
  0x32   : > { %716 = shalt.err (!%p713_p2)
}
  0x33   : > { %s881_s21 = smov 64   ;;  %s882_s27 = smov 4  }
  0x34   : > { %597 = dma.hbm_to_vmem [thread:$0]  (!%p981_p10), %s1223_s1, 256, %s148_s28, [#allocation6], %s881_s21, %s881_s21, %s882_s27  }
  0x35   : > { %s1224_s2 = sld [smem:[#allocation16_spill]] }
  0x3b   : > { %s717_s8 = scalar_lea.hbm %s1224_s2, 16 }
  0x3c   : > { %p718_p11 = scmp.ne.s32.totalorder %s1224_s2, %s717_s8  ;;  %p724_p4 = scmp.lt.u32.totalorder %s717_s8, %s1224_s2 }
  0x3e   : > { %p720_p1 = pnand %p718_p11, %p691_p12 }
  0x40   : > { %p721_p2 = pneg %p720_p1 }
  0x42   : > { %p726_p6 = pnand %p724_p4, %p721_p2 }
  0x44   : > { %729 = shalt.err (!%p726_p6)
}
  0x45   : > { %s730_s28 = scalar_lea.vmem %s985_s4, 16  ;;  %s737_s21 = scalar_lea.vmem %s985_s4, 32 }
  0x46   : > { %p731_p8 = scmp.ne.s32.totalorder %s985_s4, %s730_s28  ;;  %p738_p3 = scmp.lt.s32.totalorder %s985_s4, %s985_s4 }
  0x47   : > { %p739_p5 = scmp.lt.s32.totalorder %s737_s21, %s730_s28 }
  0x48   : > { %p733_p13 = pnand %p731_p8, %p691_p12 }
  0x49   : > { %p740_p7 = por %p739_p5, %p738_p3 }
  0x4a   : > { %p734_p0 = pneg %p733_p13 }
  0x4c   : > { %p741_p9 = pnand %p740_p7, %p734_p0 }
  0x4e   : > { %744 = shalt.err (!%p741_p9)
}
  0x4f   : > { %600 = dma.hbm_to_vmem [thread:$0]  (!%p981_p10), %s1224_s2, 16, %s985_s4, [#allocation6]  }
  0x50   : > { %s29_s5 = sadd.s32 1, %s869_s17  ;;  %s32_s6 = sadd.s32 1, %s873_s18 }
  0x51   : > { %p30_p12 = scmp.ge.s32.totalorder %s29_s5, 2  ;;  %s41_s29 = sadd.s32 1, %s857_s14 }
  0x52   : > { %p48_p11 = scmp.ne.s32.totalorder %s857_s14, %s853_s13  ;;  %p49_p1 = scmp.eq.s32.totalorder %s877_s19, 0 }
  0x53   : > { %s1245_s5 = smov (%p30_p12, %s29_s5), 0  ;;  %s1247_s6 = smov (!%p30_p12, %s32_s6), %s873_s18 }
  0x54   : > { %1225 = sst [smem:[#allocation14_spill]] %s1245_s5  ;;  %s37_s7 = ssub.s32 %s869_s17, %s1245_s5 }
  0x55   : > { %p1046_p2 = por %p49_p1, %p48_p11  ;;  %p34_p10 = scmp.ge.s32.totalorder %s1247_s6, 2 }
  0x56   : > { %p1227_p4 = scmp.ne.s32.totalorder %s1217_s23, 0  ;;  %p611_p8 = scmp.lt.s32.totalorder %s877_s19, 4 }
  0x57   : > { %s172_s9 = sand.u32 1, %s857_s14   ;;  %s1249_s6 = smov (%p34_p10, %s1247_s6), 0 }
  0x58   : > { %p1052_p6 = por %p1227_p4, %p48_p11  ;;  %s522_s10 = sshll.u32 %s172_s9, 6 }
  0x59   : > { %s36_s11 = ssub.s32 %s873_s18, %s1249_s6  ;;  %s523_s28 = sshll.u32 %s869_s17, 3 }
  0x5a   : > { %s38_s20 = sor.u32 %s37_s7, %s36_s11  ;;  %s524_s21 = sshll.u32 %s873_s18, 4 }
  0x5b   : > { %p39_p13 = scmp.eq.s32.totalorder %s38_s20, 0  ;;  %s182_s27 = sadd.s32 %s524_s21, %s523_s28 }
  0x5c   : > { %s176_s30 = scalar_lea.vmem [#allocation2], %s522_s10  ;;  %s525_s2 = sshll.u32 %s182_s27, 7 }
  0x5d   : > { %s185_s23 = sshll.u32 %s176_s30, 4  ;;  %s1072_s12 = scalar_lea.hbm %s1202_s0, %s525_s2  ;;  %s1067_s23 = int_to_ptr.vmem [resolvable:$true] %s185_s23 }
  0x5e   : > { %s1065_s1 = scalar_select %p39_p13, %s857_s14, %s41_s29  }
  0x5f   : > { %p1078_p0 = pnand %p611_p8, %p1046_p2  ;;  %s1082_s29 = scalar_lea.sflag [#allocation3], %s172_s9 }
  0x60   : > { %s745_s10 = scalar_lea.hbm %s1072_s12, 1024  ;;  %s750_s5 = scalar_lea.hbm %s1202_s0, 4096 }
  0x61   : > { %p746_p3 = scmp.ne.s32.totalorder %s1072_s12, %s745_s10  ;;  %p747_p5 = pneg %p1078_p0 }
  0x62   : > { %p751_p12 = scmp.lt.u32.totalorder %s1072_s12, %s1202_s0  ;;  %p752_p11 = scmp.lt.u32.totalorder %s750_s5, %s745_s10 }
  0x63   : > { %p748_p7 = pnand %p747_p5, %p746_p3  ;;  %p754_p2 = scmp.lt.u32.totalorder %s745_s10, %s1072_s12 }
  0x64   : > { %p753_p1 = por %p752_p11, %p751_p12 }
  0x65   : > { %p749_p9 = pneg %p748_p7 }
  0x66   : > { %p755_p10 = por %p754_p2, %p753_p1 }
  0x68   : > { %p756_p4 = pnand %p755_p10, %p749_p9 }
  0x6a   : > { %759 = shalt.err (!%p756_p4)
}
  0x6b   : > { %s760_s9 = scalar_lea.vmem %s1067_s23, 1024  ;;  %s883_s20 = smov [#allocation2]  }
  0x6c   : > { %p761_p8 = scmp.ne.s32.totalorder %s1067_s23, %s760_s9  ;;  %s765_s28 = sshll.u32 %s883_s20, 4  ;;  %s766_s28 = int_to_ptr.vmem [resolvable:$false] %s765_s28 }
  0x6d   : > { %s767_s21 = scalar_lea.vmem %s766_s28, 2048  ;;  %p768_p7 = scmp.lt.s32.totalorder %s1067_s23, %s766_s28 }
  0x6e   : > { %p763_p13 = pnand %p761_p8, %p747_p5  ;;  %p769_p12 = scmp.lt.s32.totalorder %s767_s21, %s760_s9 }
  0x70   : > { %p764_p3 = pneg %p763_p13  ;;  %p770_p11 = por %p769_p12, %p768_p7 }
  0x72   : > { %p771_p1 = pnand %p770_p11, %p764_p3 }
  0x74   : > { %774 = shalt.err (!%p771_p1)
}
  0x75   : > { %s884_s27 = smov 128   ;;  %s885_s30 = smov 8  }
  0x76   : > { %604 = dma.hbm_to_vmem [thread:$0]  (!%p1078_p0), %s1072_s12, 1024, %s1067_s23, %s1082_s29, %s884_s27, %s884_s27, %s885_s30  }
  0x77   : > { %p1230_p5 = scmp.ne.s32.totalorder %s1221_s26, 0 }
  0x78   : > { %s1113_s10 = sand.u32 (!%p1230_p5), 1, %s853_s13   ;;  %p1231_p9 = scmp.ne.s32.totalorder (!%p1230_p5), %s1218_s24, 0 }
  0x79   : > { %197 = sbr.rel (%p1230_p5) target bundleno = 375 (0x177), region = 32  ;;  %s527_s2 = sshll.u32 (!%p1230_p5), %s1113_s10, 6 }
  0x7a   : > { %s200_s25 = scalar_lea.sflag (!%p1230_p5), [#allocation3], %s1113_s10  ;;  %s203_s5 = scalar_lea.vmem (!%p1230_p5), [#allocation2], %s527_s2 }
  0x80   : > { %836 = dma.done.wait (%p1231_p9), %s200_s25, 1024  }
  0x81   : > { %838 = vsyncadd (%p1231_p9), %s200_s25, 4294966272  ;;  %p1232_p2 = scmp.ne.s32.totalorder %s1216_s22, 0 }
  0x83   : > { %840 = dma.done.wait (%p1232_p2), [#allocation6], 272  }
  0x84   : > { %842 = vsyncadd (%p1232_p2), [#allocation6], 4294967024  ;;  %v687_v0 = vld [vmem:[#allocation5] sm:$0xff]   ;;  %v688_v1 = vld [vmem:[#allocation5 + $0x8] sm:$0xff]   ;;  %vm272_vm0 = vcmask 261120   ;;  %s547_s12 = sshll.u32 %s861_s15, 3 }
  0x85   : > { %566 = vmatprep.subr.bf16.mxu0 %v687_v0  ;;  %578 = vmatprep.subr.bf16.mxu1 %v687_v0  ;;  %v237_v2 = vld [vmem:[%s203_s5] sm:$0xff]  ;;  %v238_v3 = vld [vmem:[%s203_s5 + $0x8] sm:$0xff]  ;;  %v239_v7 = vld [vmem:[%s203_s5 + $0x10] sm:$0xff]  ;;  %s548_s22 = sshll.u32 %s865_s16, 4  ;;  %s530_s24 = sshll.u32 %s1113_s10, 5  ;;  %vm382_vm1 = vcmask 257024  }
  0x86   : > { %v241_v4 = vld [vmem:[%s203_s5 + $0x20] sm:$0xff]  ;;  %567 = vmatpush3.bf16.msra.mxu0 %v687_v0  ;;  %580 = vmatpush3.bf16.msra.mxu1 %v687_v0  ;;  %v245_v5 = vpack.c.bf16 %v238_v3, %v237_v2  ;;  %v242_v6 = vld [vmem:[%s203_s5 + $0x28] sm:$0xff]  ;;  %v240_v8 = vld [vmem:[%s203_s5 + $0x18] sm:$0xff]  ;;  %s1132_s26 = sadd.s32 %s548_s22, %s547_s12  ;;  %s233_s7 = scalar_lea.vmem [#allocation8], %s530_s24 }
  0x87   : > { %568 = vmatprep.subr.bf16.mxu0 %v688_v1  ;;  %579 = vmatprep.subr.bf16.mxu1 %v688_v1  ;;  %v247_v9 = vpack.c.bf16 %v242_v6, %v241_v4  ;;  %v243_v10 = vld [vmem:[%s203_s5 + $0x30] sm:$0xff]  ;;  %v244_v11 = vld [vmem:[%s203_s5 + $0x38] sm:$0xff]  ;;  %v246_v12 = vpack.c.bf16 %v240_v8, %v239_v7  ;;  %s549_s23 = sshll.u32 %s1132_s26, 6  ;;  %s407_s15 = sshll.u32 %s233_s7, 4  ;;  %s1142_s15 = int_to_ptr.vmem [resolvable:$true] %s407_s15 }
  0x88   : > { %570 = vmatprep.mubr.msk.bf16.mxu0 %vm272_vm0, %v245_v5  ;;  %v248_v13 = vpack.c.bf16 %v244_v11, %v243_v10  ;;  %v531_v14 = vld [vmem:[#allocation7] ss:$0 sm:$0xff]  ;;  %s1140_s8 = scalar_lea.hbm %s1205_s3, %s549_s23  ;;  %s392_s11 = scalar_lea.sflag [#allocation4], %s1113_s10 }
  0x89   : > { %574 = vmatprep.mubr.msk.bf16.mxu1 %vm272_vm0, %v247_v9  ;;  %s775_s9 = scalar_lea.vmem %s1142_s15, 512  ;;  %s886_s20 = smov [#allocation8]  }
  0x8a   : > { %569 = vmatpush3.bf16.msra.mxu0 %v688_v1  ;;  %581 = vmatpush3.bf16.msra.mxu1 %v688_v1  ;;  %p776_p0 = scmp.ne.s32.totalorder %s1142_s15, %s775_s9  ;;  %s779_s28 = sshll.u32 %s886_s20, 4  ;;  %s780_s28 = int_to_ptr.vmem [resolvable:$false] %s779_s28 }
  0x8b   : > { %s781_s21 = scalar_lea.vmem %s780_s28, 1024  ;;  %p782_p8 = scmp.lt.s32.totalorder %s1142_s15, %s780_s28 }
  0x8c   : > { %p777_p10 = pnand %p776_p0, %p1052_p6  ;;  %p783_p13 = scmp.lt.s32.totalorder %s781_s21, %s775_s9 }
  0x8d   : > { %571 = vmatmul.mubr.msk.bf16.vlgmr.msra.gmra.mrb[0].mxu0 %vm272_vm0, %v246_v12  ;;  %575 = vmatmul.mubr.msk.bf16.vlgmr.msra.gmra.mrb[0].mxu1 %vm272_vm0, %v248_v13 }
  0x8e   : > { %p778_p4 = pneg %p777_p10  ;;  %p784_p3 = por %p783_p13, %p782_p8 }
  0x90   : > { %p785_p7 = pnand %p784_p3, %p778_p4 }
 0x160   : > { %v572_v15 = vpop.f32.mrb[0].mxu0  ;;  %v576_v16 = vpop.f32.mrb[0].mxu1 }
 0x161   : > { %v328_v17 = vadd.f32 %v572_v15, %v531_v14  ;;  %v344_v18 = vadd.f32 %v576_v16, %v531_v14  ;;  %v319_v19 = vpop.f32.mrb[1].mxu0  ;;  %v335_v20 = vpop.f32.mrb[1].mxu1 }
 0x162   : > { %v320_v21 = vadd.f32 %v531_v14, %v319_v19  ;;  %v336_v22 = vadd.f32 %v531_v14, %v335_v20  ;;  %v573_v23 = vpop.f32.mrb[2].mxu0  ;;  %v577_v24 = vpop.f32.mrb[2].mxu1 }
 0x163   : > { %v554_v25 = vpack.c.bf16 %v328_v17, %v328_v17  ;;  %v558_v26 = vpack.c.bf16 %v344_v18, %v344_v18  ;;  %v331_v27 = vadd.f32 %v573_v23, %v531_v14  ;;  %v347_v28 = vadd.f32 %v577_v24, %v531_v14  ;;  %v322_v29 = vpop.f32.mrb[3].mxu0  ;;  %v338_v30 = vpop.f32.mrb[3].mxu1 }
 0x164   : > { %v552_v31 = vpack.c.bf16 %v320_v21, %v320_v21  ;;  %v556_v32 = vpack.c.bf16 %v336_v22, %v336_v22  ;;  %v323_v33 = vadd.f32 %v531_v14, %v322_v29  ;;  %v339_v34 = vadd.f32 %v531_v14, %v338_v30 }
 0x165   : > { %385 = vst.msk [vmem:[%s233_s7 + $0x8] sm:$0xf] %vm382_vm1, %v554_v25  ;;  %389 = vst.msk [vmem:[%s233_s7 + $0x18] sm:$0xf] %vm382_vm1, %v558_v26  ;;  %v555_v35 = vpack.c.bf16 %v331_v27, %v331_v27  ;;  %v559_v36 = vpack.c.bf16 %v347_v28, %v347_v28 }
 0x166   : > { %383 = vst.msk [vmem:[%s233_s7] sm:$0xf] %vm382_vm1, %v552_v31  ;;  %387 = vst.msk [vmem:[%s233_s7 + $0x10] sm:$0xf] %vm382_vm1, %v556_v32  ;;  %v553_v37 = vpack.c.bf16 %v323_v33, %v323_v33  ;;  %v557_v38 = vpack.c.bf16 %v339_v34, %v339_v34 }
 0x167   : > { %386 = vst.msk [vmem:[%s233_s7 + $0xc] sm:$0xf] %vm382_vm1, %v555_v35  ;;  %390 = vst.msk [vmem:[%s233_s7 + $0x1c] sm:$0xf] %vm382_vm1, %v559_v36 }
 0x168   : > { %384 = vst.msk [vmem:[%s233_s7 + $0x4] sm:$0xf] %vm382_vm1, %v553_v37  ;;  %388 = vst.msk [vmem:[%s233_s7 + $0x14] sm:$0xf] %vm382_vm1, %v557_v38 }
 0x169   : > { %788 = shalt.err (!%p785_p7)
}
 0x16a   : > { %s789_s27 = scalar_lea.hbm %s1140_s8, 512  ;;  %s793_s25 = scalar_lea.hbm %s1205_s3, 2048 }
 0x16b   : > { %p790_p12 = scmp.ne.s32.totalorder %s1140_s8, %s789_s27  ;;  %p794_p5 = scmp.lt.u32.totalorder %s1140_s8, %s1205_s3 }
 0x16c   : > { %p795_p9 = scmp.lt.u32.totalorder %s793_s25, %s789_s27  ;;  %p797_p0 = scmp.lt.u32.totalorder %s789_s27, %s1140_s8 }
 0x16d   : > { %p791_p11 = pnand %p790_p12, %p1052_p6 }
 0x16e   : > { %p796_p2 = por %p795_p9, %p794_p5 }
 0x16f   : > { %p792_p1 = pneg %p791_p11 }
 0x170   : > { %p798_p10 = por %p797_p0, %p796_p2 }
 0x172   : > { %p799_p4 = pnand %p798_p10, %p792_p1 }
 0x174   : > { %802 = shalt.err (!%p799_p4)
}
 0x175   : > { %s887_s22 = smov 64   ;;  %s888_s24 = smov 4  }
 0x176   : > { %592 = dma.vmem_to_hbm [thread:$0]  (%p1052_p6), %s1142_s15, 512, %s1140_s8, %s392_s11, %s887_s22, %s887_s22, %s888_s24  }
 0x177 PF: > { %s1233_s26 = sld [smem:[#allocation12_spill]]  ;;  %s1234_s23 = sld [smem:[#allocation13_spill]] }
 0x178   : > { %p614_p8 = scmp.ge.s32.totalorder %s877_s19, 2 }
 0x17d   : > { %s422_s7 = sand.u32 1, %s1233_s26   ;;  %p1235_p13 = scmp.ne.s32.totalorder %s1234_s23, 0 }
 0x17e   : > { %s423_s16 = scalar_lea.sflag [#allocation4], %s422_s7 }
 0x17f   : > { %p606_p3 = pnand %p614_p8, %p1235_p13 }
 0x181   : > { %844 = dma.done.wait (!%p606_p3), %s423_s16, 512  }
 0x182   : > { %846 = vsyncadd (!%p606_p3), %s423_s16, 4294966784  ;;  %s20_s19 = sadd.s32 1, %s877_s19   ;;  %s1236_s4 = sld [smem:[#allocation14_spill]] }
 0x183   : > { %p17_p7 = scmp.ge.s32.totalorder %s20_s19, 6   ;;  %s1237_s12 = smov %s853_s13 }
 0x184   : > { %s1238_s13 = smov %s857_s14  ;;  %s1239_s14 = smov %s1065_s1 }
 0x185   : > { %s1240_s15 = smov %s869_s17  ;;  %s1241_s16 = smov %s873_s18 }
 0x186   : > { %s1243_s18 = smov %s1249_s6  ;;  %19 = sbr.rel (!%p17_p7) target bundleno = 11 (0xb), region = 85 }
 0x188   : > { %s1242_s17 = smov %s1236_s4 }
 0x18d   :  { %428 = vsyncpa [#allocation3], 1 }
 0x18e   :  { %430 = vsyncpa [#allocation3 + $0x1], 1 }
 0x18f   :  { %431 = vsyncpa [#allocation6], 1 }
 0x190   :  { %432 = vsyncpa [#allocation4], 1 }
 0x191   :  { %434 = vsyncpa [#allocation4 + $0x1], 1 }

</bundles_post_ra>
